<compile_context>
chip_gen: v6e
topology: v6e:2x2x1
jax: 0.10.0
libtpu: 0.0.40
codegen_flags: <defaults>
</compile_context>

<pallas_src>
import jax
import jax.numpy as jnp
from jax.experimental import pallas as pl
from jax.experimental.pallas import tpu as pltpu  # noqa: F401  (TPU backend import)


def _identity_alias_kernel(x_hbm_ref, o_hbm_ref):
    # Output buffer aliases the input buffer (input_output_aliases={0: 0}),
    # so the data is already sitting in the output allocation.  Nothing to
    # DMA, nothing to load into vregs, nothing to store: empty body.
    del x_hbm_ref, o_hbm_ref


def _pallas_identity(x):
    """Metadata-only identity: output aliases input, refs stay in HBM."""
    return pl.pallas_call(
        _identity_alias_kernel,
        out_shape=jax.ShapeDtypeStruct(x.shape, x.dtype),
        in_specs=[pl.BlockSpec(memory_space=pl.ANY)],   # raw HBM ref, no auto-DMA
        out_specs=pl.BlockSpec(memory_space=pl.ANY),    # raw HBM ref, no auto-DMA
        input_output_aliases={0: 0},                    # output buffer == input buffer
    )(x)


def encoder_forward(x):
    # encoder = nn.Sequential() with no layers -> identity, executed as the
    # zero-traffic aliased Pallas kernel above (kept so the forward pass goes
    # through a pallas_call as required; plain `return x` would be the
    # absolute floor if no kernel were required).
    return _pallas_identity(x)


def mlp_forward(x):
    # TODO(synk): no parametrized MLP is specified for this Classifier
    # instantiation; the composed forward is the identity, so this is a pure
    # pass-through (a second aliased kernel would only add launch overhead).
    return x


@jax.jit  # no donate_argnums: caller keeps `x` valid; XLA adds <=1 protective copy
def classifier_forward(x):
    # Classifier.forward: x = self.encoder(x); return self.mlp(x)
    x = encoder_forward(x)
    return mlp_forward(x)


if __name__ == "__main__":
    # Small deterministic input consistent with an NCHW classifier front end.
    # (Perf conclusions need tens-of-MiB tensors + xprof; this is a
    # correctness harness only.)
    key = jax.random.PRNGKey(0)
    x = jax.random.normal(key, (2, 4, 16, 16), dtype=jnp.float32)  # NCHW

    y = classifier_forward(x)
    jax.block_until_ready(y)

    # Sanity check: identity semantics (same shape, dtype, values).
    assert y.shape == x.shape and y.dtype == x.dtype
    assert bool(jnp.all(y == x))

    print("KERNEL_OK")
</pallas_src>

<mosaic_0001>
module attributes {stable_mosaic.version = 11 : i64} {
  func.func @_identity_alias_kernel(%arg0: memref<2x4x16x16xf32, #tpu.memory_space<any>>, %arg1: memref<2x4x16x16xf32, #tpu.memory_space<any>>) attributes {dimension_semantics = [], scalar_prefetch = 0 : i64, scratch_operands = 0 : i64, tpu.core_type = #tpu.core_type<tc>} {
    return
  }
}

</mosaic_0001>

<bundles_post_ra>
// kernel: classifier_forward.1
= control target key start
LH: loop header
LB: loop body
LE: loop exit
PB: predicated region body
PF: predicated region fallthrough
CT: control target
= control target key end

     0   :  { %s16_s0 = inlined_call_operand.hbm [shape: f32[2,4,16,16], index: 0, kind: input, shape index: {}, may-alias: {0,1}]   ;;  %s17_s1 = inlined_call_operand.hbm [shape: f32[2,4,16,16], index: 1, kind: output, shape index: {}, may-alias: {0,1}]  }

</bundles_post_ra>
